<compile_context>
chip_gen: v5e
topology: v5e:2x2
jax: 0.10.0
libtpu: 0.0.40
codegen_flags: <defaults>
</compile_context>

<pallas_src>
import math
from functools import partial

import jax
import jax.numpy as jnp
from jax.experimental import pallas as pl
from jax.experimental.pallas import tpu as pltpu


# ----------------------------------------------------------------------------
# elementwise helpers
# ----------------------------------------------------------------------------
def _fast_recip(x):
    # EUP approximate reciprocal + one Newton-Raphson step (~f32 accurate),
    # keeps the full-precision divide sequence off the VALU critical path.
    r = pl.reciprocal(x, approx=True)
    return r * (2.0 - x * r)


def _layer_norm(v, w, b, eps=1e-5):
    # nn.LayerNorm over the last dim, biased variance, eps=1e-5 (PyTorch default).
    mu = jnp.mean(v, axis=-1, keepdims=True)
    var = jnp.mean(jnp.square(v - mu), axis=-1, keepdims=True)
    return (v - mu) * jax.lax.rsqrt(var + eps) * w + b


def _erf(x):
    # Abramowitz & Stegun 7.1.26 rational approximation (|err| < 1.5e-7).
    # exp() goes to the EUP; reciprocal via EUP + Newton step (no true divide).
    p = 0.3275911
    a1, a2, a3, a4, a5 = (0.254829592, -0.284496736, 1.421413741,
                          -1.453152027, 1.061405429)
    s = jnp.sign(x)
    ax = jnp.abs(x)
    t = _fast_recip(1.0 + p * ax)
    poly = ((((a5 * t + a4) * t + a3) * t + a2) * t + a1) * t
    return s * (1.0 - poly * jnp.exp(-ax * ax))


def _gelu_exact(x):
    # nn.GELU() default ("none" approximation): 0.5*x*(1+erf(x/sqrt(2)))
    return 0.5 * x * (1.0 + _erf(x * (1.0 / math.sqrt(2.0))))


# ----------------------------------------------------------------------------
# Kernel A: LayerNorm1 + fused QKV projection
# ----------------------------------------------------------------------------
def ln_qkv_kernel(x_ref, ln1w_ref, ln1b_ref, wqkv_ref, bqkv_ref, qkv_ref):
    x = x_ref[0].astype(jnp.float32)                       # (ts, D)
    h = _layer_norm(x, ln1w_ref[0], ln1b_ref[0])
    qkv = jnp.dot(h.astype(wqkv_ref.dtype), wqkv_ref[...],
                  preferred_element_type=jnp.float32) + bqkv_ref[0]  # (ts, 3D)
    qkv_ref[0] = qkv.astype(qkv_ref.dtype)


# ----------------------------------------------------------------------------
# Kernel B: batched multi-head flash attention (online softmax over KV tiles)
# ----------------------------------------------------------------------------
def flash_attn_kernel(q_ref, k_ref, v_ref, o_ref, m_scr, l_scr, acc_scr, *,
                      scale):
    kv = pl.program_id(2)

    @pl.when(kv == 0)
    def _():
        m_scr[...] = jnp.full_like(m_scr, -jnp.inf)
        l_scr[...] = jnp.zeros_like(l_scr)
        acc_scr[...] = jnp.zeros_like(acc_scr)

    # heads are batched in a single einsum; contraction over head_dim of both
    # operands -> no materialized K^T.
    q = (q_ref[0].astype(jnp.float32) * scale).astype(k_ref.dtype)  # (H, tq, hd)
    k = k_ref[0]                                                    # (H, tkv, hd)
    v = v_ref[0]                                                    # (H, tkv, hd)

    s = jnp.einsum('hqd,hkd->hqk', q, k,
                   preferred_element_type=jnp.float32)              # (H, tq, tkv)

    m_prev = m_scr[...]
    m_new = jnp.maximum(m_prev, jnp.max(s, axis=-1, keepdims=True))
    alpha = jnp.exp(m_prev - m_new)
    p = jnp.exp(s - m_new)
    l_scr[...] = alpha * l_scr[...] + jnp.sum(p, axis=-1, keepdims=True)
    # TODO(synk): attention-weight dropout omitted (eval semantics).
    acc_scr[...] = alpha * acc_scr[...] + jnp.einsum(
        'hqk,hkd->hqd', p.astype(v.dtype), v,
        preferred_element_type=jnp.float32)
    m_scr[...] = m_new

    @pl.when(kv == pl.num_programs(2) - 1)
    def _():
        o_ref[0] = (acc_scr[...] * _fast_recip(l_scr[...])).astype(o_ref.dtype)


# ----------------------------------------------------------------------------
# Kernel C: out-projection + residual + LayerNorm2 + MLP (mlp_dim streamed)
# ----------------------------------------------------------------------------
def outproj_mlp_kernel(ctx_ref, x_ref, wo_ref, bo_ref, ln2w_ref, ln2b_ref,
                       w1_ref, b1_ref, w2_ref, b2_ref, o_ref,
                       y1_scr, h_scr, acc_scr):
    mi = pl.program_id(2)

    @pl.when(mi == 0)
    def _():
        attn = jnp.dot(ctx_ref[0].astype(wo_ref.dtype), wo_ref[...],
                       preferred_element_type=jnp.float32) + bo_ref[0]
        y1 = x_ref[0].astype(jnp.float32) + attn           # first residual
        y1_scr[...] = y1
        h_scr[...] = _layer_norm(y1, ln2w_ref[0], ln2b_ref[0])
        acc_scr[...] = jnp.zeros_like(acc_scr)

    # One chunk of the hidden (mlp) dimension per grid step: the (S, mlp)
    # GELU intermediate and the big MLP weights are never fully resident.
    m = jnp.dot(h_scr[...].astype(w1_ref.dtype), w1_ref[...],
                preferred_element_type=jnp.float32) + b1_ref[0]      # (ts, tm)
    m = _gelu_exact(m)
    # TODO(synk): MLP dropouts omitted (eval semantics).
    acc_scr[...] += jnp.dot(m.astype(w2_ref.dtype), w2_ref[...],
                            preferred_element_type=jnp.float32)      # (ts, D)

    @pl.when(mi == pl.num_programs(2) - 1)
    def _():
        o_ref[0] = (y1_scr[...] + acc_scr[...] + b2_ref[0]).astype(o_ref.dtype)


# ----------------------------------------------------------------------------
# wrapper
# ----------------------------------------------------------------------------
def _pick_tile(n, cap, align):
    """Largest divisor of n that is <= cap and a multiple of `align`;
    falls back to n itself (a full-extent block is always legal)."""
    if n <= cap:
        return n
    for t in range(cap, align - 1, -1):
        if n % t == 0 and t % align == 0:
            return t
    return n


def _cparams(sem):
    # raise the scoped-VMEM limit above the 16/32 MiB defaults (still within
    # every chip's physical VMEM, incl. v7x's 64 MiB).
    return pltpu.CompilerParams(dimension_semantics=sem,
                                vmem_limit_bytes=64 * 1024 * 1024)


def transformer_encoder_block(x, params, *, num_heads,
                              seq_tile=256, q_tile=256, kv_tile=512,
                              mlp_tile=512):
    B, S, D = x.shape
    assert D % num_heads == 0
    hd = D // num_heads
    mlp_dim = params["w1"].shape[1]
    dtype = x.dtype

    ts = _pick_tile(S, seq_tile, 8)
    tq = _pick_tile(S, q_tile, 8)
    tkv = _pick_tile(S, kv_tile, 8)
    tm = _pick_tile(mlp_dim, mlp_tile, 128)

    # ---- Kernel A: LN1 + QKV projection -----------------------------------
    qkv = pl.pallas_call(
        ln_qkv_kernel,
        out_shape=jax.ShapeDtypeStruct((B, S, 3 * D), dtype),
        grid=(B, S // ts),
        in_specs=[
            pl.BlockSpec((1, ts, D), lambda b, s: (b, s, 0)),
            pl.BlockSpec((1, D), lambda b, s: (0, 0)),
            pl.BlockSpec((1, D), lambda b, s: (0, 0)),
            pl.BlockSpec((D, 3 * D), lambda b, s: (0, 0)),
            pl.BlockSpec((1, 3 * D), lambda b, s: (0, 0)),
        ],
        out_specs=pl.BlockSpec((1, ts, 3 * D), lambda b, s: (b, s, 0)),
        compiler_params=_cparams(("parallel", "parallel")),
    )(x, params["ln1_w"], params["ln1_b"], params["w_qkv"], params["b_qkv"])

    # layout plumbing (plain XLA, lane-dense): (B,S,3D) -> 3 x (B,H,S,hd)
    qkv_t = qkv.reshape(B, S, 3, num_heads, hd).transpose(2, 0, 3, 1, 4)
    q, k, v = qkv_t[0], qkv_t[1], qkv_t[2]

    # ---- Kernel B: flash attention -----------------------------------------
    ctx = pl.pallas_call(
        partial(flash_attn_kernel, scale=1.0 / math.sqrt(hd)),
        out_shape=jax.ShapeDtypeStruct((B, num_heads, S, hd), dtype),
        grid=(B, S // tq, S // tkv),
        in_specs=[
            pl.BlockSpec((1, num_heads, tq, hd), lambda b, i, j: (b, 0, i, 0)),
            pl.BlockSpec((1, num_heads, tkv, hd), lambda b, i, j: (b, 0, j, 0)),
            pl.BlockSpec((1, num_heads, tkv, hd), lambda b, i, j: (b, 0, j, 0)),
        ],
        out_specs=pl.BlockSpec((1, num_heads, tq, hd),
                               lambda b, i, j: (b, 0, i, 0)),
        scratch_shapes=[
            pltpu.VMEM((num_heads, tq, 1), jnp.float32),   # running max
            pltpu.VMEM((num_heads, tq, 1), jnp.float32),   # running sum
            pltpu.VMEM((num_heads, tq, hd), jnp.float32),  # accumulator
        ],
        compiler_params=_cparams(("parallel", "parallel", "arbitrary")),
    )(q, k, v)

    # merge heads back: (B,H,S,hd) -> (B,S,D)  (layout plumbing, plain XLA)
    ctx_m = ctx.transpose(0, 2, 1, 3).reshape(B, S, D)

    # ---- Kernel C: out-proj + residual + LN2 + streamed MLP + residual -----
    y = pl.pallas_call(
        outproj_mlp_kernel,
        out_shape=jax.ShapeDtypeStruct((B, S, D), dtype),
        grid=(B, S // ts, mlp_dim // tm),
        in_specs=[
            pl.BlockSpec((1, ts, D), lambda b, s, m: (b, s, 0)),   # ctx
            pl.BlockSpec((1, ts, D), lambda b, s, m: (b, s, 0)),   # x (residual)
            pl.BlockSpec((D, D), lambda b, s, m: (0, 0)),          # W_o^T
            pl.BlockSpec((1, D), lambda b, s, m: (0, 0)),          # b_o
            pl.BlockSpec((1, D), lambda b, s, m: (0, 0)),          # ln2 gamma
            pl.BlockSpec((1, D), lambda b, s, m: (0, 0)),          # ln2 beta
            pl.BlockSpec((D, tm), lambda b, s, m: (0, m)),         # W1^T chunk
            pl.BlockSpec((1, tm), lambda b, s, m: (0, m)),         # b1 chunk
            pl.BlockSpec((tm, D), lambda b, s, m: (m, 0)),         # W2^T chunk
            pl.BlockSpec((1, D), lambda b, s, m: (0, 0)),          # b2
        ],
        out_specs=pl.BlockSpec((1, ts, D), lambda b, s, m: (b, s, 0)),
        scratch_shapes=[pltpu.VMEM((ts, D), jnp.float32),   # y1 (residual in)
                        pltpu.VMEM((ts, D), jnp.float32),   # LN2(y1)
                        pltpu.VMEM((ts, D), jnp.float32)],  # MLP accumulator
        compiler_params=_cparams(("parallel", "parallel", "arbitrary")),
    )(ctx_m, x, params["w_o"], params["b_o"], params["ln2_w"], params["ln2_b"],
      params["w1"], params["b1"], params["w2"], params["b2"])

    return y


# ----------------------------------------------------------------------------
# pure-JAX reference (eval-mode PyTorch semantics) for a correctness check
# ----------------------------------------------------------------------------
def _reference(x, params, num_heads):
    def ln(v, w, b, eps=1e-5):
        mu = v.mean(-1, keepdims=True)
        var = ((v - mu) ** 2).mean(-1, keepdims=True)
        return (v - mu) / jnp.sqrt(var + eps) * w + b

    B, S, D = x.shape
    hd = D // num_heads
    h = ln(x, params["ln1_w"][0], params["ln1_b"][0])
    qkv = h @ params["w_qkv"] + params["b_qkv"][0]
    q, k, v = qkv[..., :D], qkv[..., D:2 * D], qkv[..., 2 * D:]
    q = q.reshape(B, S, num_heads, hd).transpose(0, 2, 1, 3)
    k = k.reshape(B, S, num_heads, hd).transpose(0, 2, 1, 3)
    v = v.reshape(B, S, num_heads, hd).transpose(0, 2, 1, 3)
    s = jnp.einsum('bhqd,bhkd->bhqk', q, k) / math.sqrt(hd)
    p = jax.nn.softmax(s, axis=-1)
    ctx = jnp.einsum('bhqk,bhkd->bhqd', p, v)
    ctx = ctx.transpose(0, 2, 1, 3).reshape(B, S, D)
    x = x + ctx @ params["w_o"] + params["b_o"][0]
    h2 = ln(x, params["ln2_w"][0], params["ln2_b"][0])
    m = h2 @ params["w1"] + params["b1"][0]
    m = 0.5 * m * (1.0 + jax.lax.erf(m / math.sqrt(2.0)))
    m = m @ params["w2"] + params["b2"][0]
    return x + m


if __name__ == "__main__":
    # Small, module-consistent shapes: batch=2, seq=8, emb_dim=32, heads=4, mlp=64
    B, S, D, H, MLP = 2, 8, 32, 4, 64

    key = jax.random.PRNGKey(0)
    k_qkv, k_o, k_w1, k_b1, k_w2, k_b2, k_x = jax.random.split(key, 7)

    # Deterministic synthetic parameters (PyTorch shapes, stored pre-transposed
    # where noted so the kernels compute h @ W).
    params = {
        "ln1_w": jnp.ones((1, D), jnp.float32),
        "ln1_b": jnp.zeros((1, D), jnp.float32),
        # nn.MultiheadAttention.in_proj_weight: (3D, D) -> store transpose (D, 3D)
        "w_qkv": (0.02 * jax.random.normal(k_qkv, (3 * D, D))).T.astype(jnp.float32),
        "b_qkv": jnp.zeros((1, 3 * D), jnp.float32),
        # out_proj.weight: (D, D) -> store transpose
        "w_o": (0.02 * jax.random.normal(k_o, (D, D))).T.astype(jnp.float32),
        "b_o": jnp.zeros((1, D), jnp.float32),
        "ln2_w": jnp.ones((1, D), jnp.float32),
        "ln2_b": jnp.zeros((1, D), jnp.float32),
        # mlp[0]: Linear(D, MLP) weight (MLP, D) -> store transpose (D, MLP)
        "w1": (0.02 * jax.random.normal(k_w1, (MLP, D))).T.astype(jnp.float32),
        "b1": (0.02 * jax.random.normal(k_b1, (1, MLP))).astype(jnp.float32),
        # mlp[3]: Linear(MLP, D) weight (D, MLP) -> store transpose (MLP, D)
        "w2": (0.02 * jax.random.normal(k_w2, (D, MLP))).T.astype(jnp.float32),
        "b2": (0.02 * jax.random.normal(k_b2, (1, D))).astype(jnp.float32),
    }

    x = jax.random.normal(k_x, (B, S, D), jnp.float32)

    out = transformer_encoder_block(x, params, num_heads=H)
    out = jax.block_until_ready(out)
    assert out.shape == (B, S, D) and out.dtype == jnp.float32

    ref = jax.block_until_ready(_reference(x, params, H))
    assert jnp.allclose(out, ref, rtol=1e-3, atol=1e-3), "mismatch vs reference"

    print("KERNEL_OK")
</pallas_src>

<mosaic_0001>
module attributes {stable_mosaic.version = 11 : i64} {
  func.func @ln_qkv_kernel(%arg0: i32, %arg1: i32, %arg2: memref<1x8x32xf32, #tpu.memory_space<vmem>>, %arg3: memref<1x32xf32, #tpu.memory_space<vmem>>, %arg4: memref<1x32xf32, #tpu.memory_space<vmem>>, %arg5: memref<32x96xf32, #tpu.memory_space<vmem>>, %arg6: memref<1x96xf32, #tpu.memory_space<vmem>>, %arg7: memref<1x8x96xf32, #tpu.memory_space<vmem>>) attributes {dimension_semantics = [#tpu.dimension_semantics<parallel>, #tpu.dimension_semantics<parallel>], iteration_bounds = array<i64: 2, 1>, scalar_prefetch = 0 : i64, scratch_operands = 0 : i64, tpu.core_type = #tpu.core_type<tc>, window_params = [{transform_indices = @transform_0, window_bounds = array<i64: 1, 8, 32>}, {pipeline_mode = #tpu.pipeline_mode<synchronous>, transform_indices = @transform_1, window_bounds = array<i64: 1, 32>}, {pipeline_mode = #tpu.pipeline_mode<synchronous>, transform_indices = @transform_2, window_bounds = array<i64: 1, 32>}, {pipeline_mode = #tpu.pipeline_mode<synchronous>, transform_indices = @transform_3, window_bounds = array<i64: 32, 96>}, {pipeline_mode = #tpu.pipeline_mode<synchronous>, transform_indices = @transform_4, window_bounds = array<i64: 1, 96>}, {transform_indices = @transform_5, window_bounds = array<i64: 1, 8, 96>}]} {
    %c0 = arith.constant 0 : index
    %c0_0 = arith.constant 0 : index
    %c0_1 = arith.constant 0 : index
    %0 = vector.load %arg2[%c0, %c0_0, %c0_1] : memref<1x8x32xf32, #tpu.memory_space<vmem>>, vector<1x8x32xf32>
    %1 = vector.shape_cast %0 : vector<1x8x32xf32> to vector<8x32xf32>
    %c0_2 = arith.constant 0 : index
    %c0_3 = arith.constant 0 : index
    %2 = vector.load %arg3[%c0_2, %c0_3] : memref<1x32xf32, #tpu.memory_space<vmem>>, vector<1x32xf32>
    %3 = vector.shape_cast %2 : vector<1x32xf32> to vector<32xf32>
    %c0_4 = arith.constant 0 : index
    %c0_5 = arith.constant 0 : index
    %4 = vector.load %arg4[%c0_4, %c0_5] : memref<1x32xf32, #tpu.memory_space<vmem>>, vector<1x32xf32>
    %5 = vector.shape_cast %4 : vector<1x32xf32> to vector<32xf32>
    %cst = arith.constant dense<0.000000e+00> : vector<8xf32>
    %6 = vector.multi_reduction <add>, %1, %cst [1] : vector<8x32xf32> to vector<8xf32>
    %7 = vector.shape_cast %6 : vector<8xf32> to vector<8x1xf32>
    %cst_6 = arith.constant 3.200000e+01 : f32
    %8 = vector.broadcast %cst_6 : f32 to vector<8x1xf32>
    %9 = arith.divf %7, %8 : vector<8x1xf32>
    %10 = vector.broadcast %9 : vector<8x1xf32> to vector<8x32xf32>
    %11 = arith.subf %1, %10 : vector<8x32xf32>
    %12 = arith.mulf %11, %11 : vector<8x32xf32>
    %cst_7 = arith.constant dense<0.000000e+00> : vector<8xf32>
    %13 = vector.multi_reduction <add>, %12, %cst_7 [1] : vector<8x32xf32> to vector<8xf32>
    %14 = vector.shape_cast %13 : vector<8xf32> to vector<8x1xf32>
    %cst_8 = arith.constant 3.200000e+01 : f32
    %15 = vector.broadcast %cst_8 : f32 to vector<8x1xf32>
    %16 = arith.divf %14, %15 : vector<8x1xf32>
    %17 = vector.broadcast %9 : vector<8x1xf32> to vector<8x32xf32>
    %18 = arith.subf %1, %17 : vector<8x32xf32>
    %cst_9 = arith.constant 9.99999974E-6 : f32
    %19 = vector.broadcast %cst_9 : f32 to vector<8x1xf32>
    %20 = arith.addf %16, %19 : vector<8x1xf32>
    %21 = math.rsqrt %20 : vector<8x1xf32>
    %22 = vector.broadcast %21 : vector<8x1xf32> to vector<8x32xf32>
    %23 = arith.mulf %18, %22 : vector<8x32xf32>
    %24 = vector.shape_cast %3 : vector<32xf32> to vector<1x32xf32>
    %25 = vector.broadcast %24 : vector<1x32xf32> to vector<8x32xf32>
    %26 = arith.mulf %23, %25 : vector<8x32xf32>
    %27 = vector.shape_cast %5 : vector<32xf32> to vector<1x32xf32>
    %28 = vector.broadcast %27 : vector<1x32xf32> to vector<8x32xf32>
    %29 = arith.addf %26, %28 : vector<8x32xf32>
    %c0_10 = arith.constant 0 : index
    %c0_11 = arith.constant 0 : index
    %30 = vector.load %arg5[%c0_10, %c0_11] : memref<32x96xf32, #tpu.memory_space<vmem>>, vector<32x96xf32>
    %cst_12 = arith.constant dense<0.000000e+00> : vector<8x96xf32>
    %31 = tpu.matmul %29, %30, %cst_12 {dimension_numbers = #tpu.dot_dimension_numbers<[1], [0], [0], [1], [0, 0, 1, 1], [], []>} : vector<8x32xf32>, vector<32x96xf32>, vector<8x96xf32> -> vector<8x96xf32>
    %c0_13 = arith.constant 0 : index
    %c0_14 = arith.constant 0 : index
    %32 = vector.load %arg6[%c0_13, %c0_14] : memref<1x96xf32, #tpu.memory_space<vmem>>, vector<1x96xf32>
    %33 = vector.shape_cast %32 : vector<1x96xf32> to vector<96xf32>
    %34 = vector.shape_cast %33 : vector<96xf32> to vector<1x96xf32>
    %35 = vector.broadcast %34 : vector<1x96xf32> to vector<8x96xf32>
    %36 = arith.addf %31, %35 : vector<8x96xf32>
    %c0_15 = arith.constant 0 : index
    %c0_16 = arith.constant 0 : index
    %c0_17 = arith.constant 0 : index
    %37 = vector.load %arg7[%c0_15, %c0_16, %c0_17] : memref<1x8x96xf32, #tpu.memory_space<vmem>>, vector<1x8x96xf32>
    %38 = vector.shape_cast %37 : vector<1x8x96xf32> to vector<8x96xf32>
    %39 = vector.shape_cast %36 : vector<8x96xf32> to vector<1x8x96xf32>
    tpu.vector_store %arg7[%c0_15, %c0_16, %c0_17], %39 {strides = array<i32>} : memref<1x8x96xf32, #tpu.memory_space<vmem>>, vector<1x8x96xf32>,
    return
  }
  func.func @transform_0(%arg0: i32, %arg1: i32) -> (i32, i32, i32) {
    %c0_i32 = arith.constant 0 : i32
    %c0_i32_0 = arith.constant 0 : i32
    return %arg0, %arg1, %c0_i32 : i32, i32, i32
  }
  func.func @transform_1(%arg0: i32, %arg1: i32) -> (i32, i32) {
    %c0_i32 = arith.constant 0 : i32
    %c0_i32_0 = arith.constant 0 : i32
    %c0_i32_1 = arith.constant 0 : i32
    return %c0_i32, %c0_i32_0 : i32, i32
  }
  func.func @transform_2(%arg0: i32, %arg1: i32) -> (i32, i32) {
    %c0_i32 = arith.constant 0 : i32
    %c0_i32_0 = arith.constant 0 : i32
    %c0_i32_1 = arith.constant 0 : i32
    return %c0_i32, %c0_i32_0 : i32, i32
  }
  func.func @transform_3(%arg0: i32, %arg1: i32) -> (i32, i32) {
    %c0_i32 = arith.constant 0 : i32
    %c0_i32_0 = arith.constant 0 : i32
    %c0_i32_1 = arith.constant 0 : i32
    return %c0_i32, %c0_i32_0 : i32, i32
  }
  func.func @transform_4(%arg0: i32, %arg1: i32) -> (i32, i32) {
    %c0_i32 = arith.constant 0 : i32
    %c0_i32_0 = arith.constant 0 : i32
    %c0_i32_1 = arith.constant 0 : i32
    return %c0_i32, %c0_i32_0 : i32, i32
  }
  func.func @transform_5(%arg0: i32, %arg1: i32) -> (i32, i32, i32) {
    %c0_i32 = arith.constant 0 : i32
    %c0_i32_0 = arith.constant 0 : i32
    return %arg0, %arg1, %c0_i32 : i32, i32, i32
  }
}

</mosaic_0001>

<bundles_post_ra>
// kernel: tpu_custom_call.1
= control target key start
LH: loop header
LB: loop body
LE: loop exit
PB: predicated region body
PF: predicated region fallthrough
CT: control target
= control target key end

     0   :  { %10 = vsyncpa [#allocation3], 0  ;;  %s963_s0 = inlined_call_operand.hbm [shape: f32[2,8,32], index: 0, kind: input, shape index: {}]   ;;  %s964_s1 = inlined_call_operand.hbm [shape: f32[1,32], index: 1, kind: input, shape index: {}]   ;;  %s965_s2 = inlined_call_operand.vmem [shape: f32[1,32], index: 2, kind: input, shape index: {}]   ;;  %s966_s3 = inlined_call_operand.hbm [shape: f32[32,96], index: 3, kind: input, shape index: {}]   ;;  %s967_s4 = inlined_call_operand.vmem [shape: f32[1,96], index: 4, kind: input, shape index: {}]   ;;  %s968_s5 = inlined_call_operand.hbm [shape: f32[2,8,96], index: 5, kind: output, shape index: {}]  }
   0x1   :  { %12 = vsyncpa [#allocation3 + $0x1], 0 }
   0x2   :  { %13 = vsyncpa [#allocation6], 0 }
   0x3   :  { %14 = vsyncpa [#allocation4], 0 }
   0x4   :  { %16 = vsyncpa [#allocation4 + $0x1], 0  ;;  %s804_s18 = smov 0   ;;  %s806_s19 = smov 0  }
   0x5   :  { %s808_s20 = smov 0   ;;  %s810_s21 = smov 0  }
   0x6   :  { %s812_s22 = smov 0   ;;  %s814_s23 = smov 0  }
   0x7 LB: > { %s480_s24 = sadd.s32 4294967295, %s767_s23   ;;  %s481_s25 = sadd.s32 4294967294, %s767_s23   ;;  %s767_s23 = sphi %s814_s23, %s22_s23   ;;  %s763_s22 = sphi %s812_s22, %s978_s22   ;;  %s759_s21 = sphi %s810_s21, %s977_s21   ;;  %s755_s20 = sphi %s808_s20, %s976_s20   ;;  %s751_s19 = sphi %s806_s19, %s975_s19   ;;  %s747_s18 = sphi %s804_s18, %s974_s18  }
   0x8   : > { %p56_p0 = scmp.ne.s32.totalorder %s751_s19, %s747_s18  ;;  %p840_p1 = scmp.eq.s32.totalorder %s480_s24, 0 }
   0x9   : > { %p172_p2 = scmp.eq.s32.totalorder %s481_s25, 1  ;;  %p482_p4 = scmp.ge.s32.totalorder %s767_s23, 1 }
   0xa   : > { %p846_p3 = por %p840_p1, %p56_p0  ;;  %p179_p6 = scmp.lt.s32.totalorder %s767_s23, 3 }
   0xb   : > { %p851_p5 = por %p172_p2, %p56_p0  ;;  %s191_s6 = sshll.u32 %s964_s1, 4  ;;  %s192_s6 = int_to_ptr.hbm [resolvable:$true] %s191_s6 }
   0xc   : > { %p859_p7 = pnand %p482_p4, %p179_p6  ;;  %p485_p8 = scmp.ge.s32.totalorder %s767_s23, 2 }
   0xd   : > { %s769_s8 = smov [#allocation5]   ;;  %s205_s12 = sshll.u32 %s966_s3, 4  ;;  %s206_s12 = int_to_ptr.hbm [resolvable:$true] %s205_s12 }
   0xe   : > { %p510_p9 = pneg %p859_p7  ;;  %s193_s9 = sshll.u32 %s769_s8, 4  ;;  %s194_s9 = int_to_ptr.vmem [resolvable:$true] %s193_s9 }
   0xf   : > { %s770_s13 = smov [#allocation7]   ;;  %s771_s15 = smov 128  }
  0x10   : > { %p511_p10 = pnand %p510_p9, %p840_p1  ;;  %s207_s14 = sshll.u32 %s770_s13, 4  ;;  %s208_s14 = int_to_ptr.vmem [resolvable:$true] %s207_s14 }
  0x11   : > { %s772_s16 = smov 8   ;;  %p166_p11 = scmp.eq.s32.totalorder %s480_s24, 1 }
  0x12   : > { %513 = dma.hbm_to_vmem [thread:$0]  (!%p511_p10), %s192_s6, 16, %s194_s9, [#allocation6]  }
  0x13   : > { %516 = dma.hbm_to_vmem [thread:$0]  (!%p511_p10), %s206_s12, 512, %s208_s14, [#allocation6], %s771_s15, %s771_s15, %s772_s16  }
  0x14   : > { %s34_s17 = sadd.s32 1, %s763_s22  ;;  %s43_s25 = sadd.s32 1, %s755_s20 }
  0x15   : > { %p36_p12 = scmp.ge.s32.totalorder %s34_s17, 2  ;;  %p50_p13 = scmp.ne.s32.totalorder %s755_s20, %s751_s19 }
  0x16   : > { %p51_p0 = scmp.eq.s32.totalorder %s767_s23, 0  ;;  %p527_p4 = scmp.lt.s32.totalorder %s767_s23, 2 }
  0x17   : > { %s980_s17 = smov (%p36_p12, %s34_s17), 0  ;;  %p880_p2 = por %p166_p11, %p50_p13 }
  0x18   : > { %s38_s30 = ssub.s32 %s763_s22, %s980_s17  ;;  %s224_s6 = sand.u32 1, %s755_s20  }
  0x19   : > { %p41_p6 = scmp.eq.s32.totalorder %s38_s30, 0  ;;  %p52_p9 = por %p51_p0, %p50_p13 }
  0x1a   : > { %s486_s8 = sshll.u32 %s224_s6, 3  ;;  %s487_s24 = sshll.u32 %s763_s22, 3 }
  0x1b   : > { %s890_s9 = scalar_select %p41_p6, %s755_s20, %s43_s25  }
  0x1c   : > { %s233_s12 = scalar_lea.hbm %s963_s0, %s487_s24  ;;  %s228_s14 = scalar_lea.vmem [#allocation2], %s486_s8 }
  0x1d   : > { %s235_s13 = sshll.u32 %s233_s12, 4  ;;  %s237_s15 = sshll.u32 %s228_s14, 4  ;;  %s236_s13 = int_to_ptr.hbm [resolvable:$true] %s235_s13  ;;  %s238_s15 = int_to_ptr.vmem [resolvable:$true] %s237_s15 }
  0x1e   : > { %p518_p10 = pnand %p527_p4, %p52_p9  ;;  %s225_s16 = scalar_lea.sflag [#allocation3], %s224_s6 }
  0x1f   : > { %246 = sbr.rel (%p859_p7) target bundleno = 439 (0x1b7), region = 40  ;;  %s900_s25 = sand.u32 (!%p859_p7), 1, %s751_s19  }
  0x20   : > { %520 = dma.hbm_to_vmem [thread:$0]  (!%p518_p10), %s236_s13, 128, %s238_s15, %s225_s16  }
  0x21   : > { %s489_s30 = sshll.u32 (!%p859_p7), %s900_s25, 3  ;;  %s249_s24 = scalar_lea.sflag (!%p859_p7), [#allocation3], %s900_s25 }
  0x22   : > { %s252_s8 = scalar_lea.vmem (!%p859_p7), [#allocation2], %s489_s30 }
  0x24   : > { %734 = dma.done.wait (%p846_p3), %s249_s24, 128  }
  0x25   : > { %736 = vsyncadd (%p846_p3), %s249_s24, 4294967168 }
  0x26   : > { %738 = dma.done.wait (%p840_p1), [#allocation6], 528  }
  0x27   : > { %740 = vsyncadd (%p840_p1), [#allocation6], 4294966768  ;;  %vm293_vm0 = vcmask 261120   ;;  %v290_v0 = vld [vmem:[%s252_s8] sm:$0xff]  ;;  %v773_v2 = vmov 32.0   ;;  %v331_v17 = vld [vmem:[#allocation7] sm:$0xff] }
  0x28   : > { %v294_v1 = vsel %vm293_vm0, %v290_v0, 0.0  ;;  %587 = vrcp.f32 %v773_v2  ;;  %v334_v14 = vld [vmem:[#allocation7 + $0x18] sm:$0xff]  ;;  %v333_v15 = vld [vmem:[#allocation7 + $0x10] sm:$0xff]  ;;  %v332_v16 = vld [vmem:[#allocation7 + $0x8] sm:$0xff]  ;;  %s495_s7 = sshll.u32 %s759_s21, 3  ;;  %s289_s14 = scalar_lea.vmem [#allocation8], %s489_s30 }
  0x29   : > { %295 = vadd.xlane.f32.xlu0 %v294_v1  ;;  %354 = vmatpush.msra.mxu0 %v334_v14  ;;  %v584_v27 = vld [vmem:[#allocation5] ss:$0 sm:$0xff]  ;;  %v585_v30 = vld [vmem:[%s965_s2] ss:$0 sm:$0xff]  ;;  %s376_s11 = scalar_lea.hbm %s968_s5, %s495_s7  ;;  %s378_s15 = sshll.u32 %s289_s14, 4  ;;  %vm362_vm5 = vcmask 785408   ;;  %s379_s15 = int_to_ptr.vmem [resolvable:$true] %s378_s15 }
  0x2a   : > { %v586_v33 = vld [vmem:[%s967_s4] ss:$0 sm:$0xff]  ;;  %s380_s16 = sshll.u32 %s376_s11, 4  ;;  %s365_s21 = scalar_lea.sflag [#allocation4], %s900_s25  ;;  %s381_s16 = int_to_ptr.hbm [resolvable:$true] %s380_s16 }
  0x2b   : > { %355 = vmatpush.msra.mxu0 %v333_v15  ;;  %s695_s24 = sshra.s32 %s381_s16, 4  ;;  %s701_s30 = scalar_lea.hbm %s968_s5, 16  ;;  %s696_s24 = int_to_ptr.hbm [resolvable:$true] %s695_s24 }
  0x2c   : > { %s697_s8 = scalar_lea.hbm %s696_s24, 8  ;;  %p702_p11 = scmp.lt.s32.totalorder %s696_s24, %s968_s5 }
  0x2d   : > { %356 = vmatpush.msra.mxu0 %v332_v16  ;;  %p698_p1 = scmp.ne.s32.totalorder %s696_s24, %s697_s8  ;;  %p703_p12 = scmp.lt.s32.totalorder %s701_s30, %s697_s8 }
  0x2e   : > { %v588_v3 = vpop.eup %587 }
  0x2f   : > { %v298_v4 = vmul.f32 32.0, %v588_v3  ;;  %vm302_vm1 = vweird.f32 %v588_v3  ;;  %357 = vmatpush.msra.mxu0 %v331_v17  ;;  %p699_p3 = pnand %p698_p1, %p880_p2  ;;  %p704_p13 = por %p703_p12, %p702_p11 }
  0x31   : > { %v299_v5 = vsub.f32 1.0, %v298_v4  ;;  %p700_p7 = pneg %p699_p3 }
  0x33   : > { %v300_v6 = vmul.f32 %v588_v3, %v299_v5  ;;  %p705_p0 = pnand %p704_p13, %p700_p7 }
  0x35   : > { %v301_v7 = vadd.f32 %v588_v3, %v300_v6 }
  0x37   : > { %v303_v8 = vsel %vm302_vm1, %v588_v3, %v301_v7 }
  0x9c   : > { %v296_v9 = vpop.xlane.xlu0 %295 }
  0x9d   : > { %v304_v10 = vmul.f32 %v303_v8, %v296_v9 }
  0x9f   : > { %v305_v11 = vsub.f32 %v290_v0, %v304_v10 }
  0xa1   : > { %v306_v12 = vmul.f32 %v305_v11, %v305_v11 }
  0xa3   : > { %v307_v13 = vsel %vm293_vm0, %v306_v12, 0.0 }
  0xa4   : > { %308 = vadd.xlane.f32.xlu0 %v307_v13 }
 0x117   : > { %v309_v18 = vpop.xlane.xlu0 %308 }
 0x118   : > { %v310_v19 = vmul.f32 %v309_v18, %v303_v8 }
 0x11a   : > { %v311_v20 = vadd.f32 1e-05, %v310_v19 }
 0x11c   : > { %589 = vrsqrt.f32 %v311_v20  ;;  %vm318_vm3 = vweird.f32 %v311_v20 }
 0x122   : > { %v590_v21 = vpop.eup %589 }
 0x123   : > { %v313_v22 = vmul.f32 %v590_v21, %v311_v20  ;;  %vm319_vm2 = vweird.f32 %v590_v21 }
 0x124   : > { %vm320_vm4 = vmor %vm318_vm3, %vm319_vm2 }
 0x125   : > { %v314_v23 = vmul.f32 %v590_v21, %v313_v22 }
 0x127   : > { %v315_v24 = vmul.f32 0.5, %v314_v23 }
 0x129   : > { %v316_v25 = vsub.f32 1.5, %v315_v24 }
 0x12b   : > { %v317_v26 = vmul.f32 %v590_v21, %v316_v25 }
 0x12d   : > { %v321_v28 = vsel %vm320_vm4, %v590_v21, %v317_v26 }
 0x12e   : > { %v322_v29 = vmul.f32 %v321_v28, %v305_v11 }
 0x130   : > { %v326_v31 = vmul.f32 %v584_v27, %v322_v29 }
 0x132   : > { %v330_v32 = vadd.f32 %v585_v30, %v326_v31 }
 0x134   : > { %493 = vmatmul.msk.f32.vlgmr.msra.gmra.mxu0 %vm293_vm0, %v330_v32 }
 0x1b1   : > { %v359_v34 = vpop.f32.mrf.mxu0 }
 0x1b2   : > { %v360_v35 = vadd.f32 %v586_v33, %v359_v34 }
 0x1b4   : > { %363 = vst.msk [vmem:[%s289_s14] sm:$0xff] %vm362_vm5, %v360_v35 }
 0x1b5   : > { %708 = shalt.err (!%p705_p0)
}
 0x1b6   : > { %508 = dma.vmem_to_hbm [thread:$0]  (%p880_p2), %s379_s15, 128, %s381_s16, %s365_s21  }
 0x1b7 PF: > { %s392_s25 = sand.u32 1, %s747_s18   ;;  %p522_p4 = pnand %p485_p8, %p851_p5 }
 0x1b8   : > { %s393_s10 = scalar_lea.sflag [#allocation4], %s392_s25 }
 0x1b9   : > { %p523_p6 = pneg %p522_p4 }
 0x1bb   : > { %742 = dma.done.wait (%p523_p6), %s393_s10, 128  }
 0x1bc   : > { %744 = vsyncadd (%p523_p6), %s393_s10, 4294967168  ;;  %s22_s23 = sadd.s32 1, %s767_s23   ;;  %s974_s18 = smov %s751_s19 }
 0x1bd   : > { %p19_p9 = scmp.ge.s32.totalorder %s22_s23, 4   ;;  %s975_s19 = smov %s755_s20 }
 0x1be   : > { %s976_s20 = smov %s890_s9  ;;  %s977_s21 = smov %s763_s22 }
 0x1bf   : > { %s978_s22 = smov %s980_s17  ;;  %21 = sbr.rel (!%p19_p9) target bundleno = 7 (0x7), region = 93 }
 0x1c4   :  { %399 = vsyncpa [#allocation3], 1 }
 0x1c5   :  { %401 = vsyncpa [#allocation3 + $0x1], 1 }
 0x1c6   :  { %402 = vsyncpa [#allocation6], 1 }
 0x1c7   :  { %403 = vsyncpa [#allocation4], 1 }
 0x1c8   :  { %405 = vsyncpa [#allocation4 + $0x1], 1 }

</bundles_post_ra>
